<compile_context>
chip_gen: v6e
topology: v6e:2x2x1
jax: 0.10.0
libtpu: 0.0.40
codegen_flags: <defaults>
</compile_context>

<pallas_src>
import functools

import jax
import jax.numpy as jnp
from jax import lax
from jax.experimental import pallas as pl
from jax.experimental.pallas import tpu as pltpu

N_IN = 3
N_OUT = 10
N_CAT = 4 * N_OUT  # 40
BN_EPS = 1e-5
MAX_ROW_TILE = 2048  # multiple of 8; fits double-buffered VMEM on all generations


def stats_kernel(x_ref, w_ref, b_ref, stats_ref, *, n_total, tn):
    """Pass 1: accumulate per-feature sum / sum-of-squares of the 10 unique features."""
    i = pl.program_id(0)

    @pl.when(i == 0)
    def _():
        stats_ref[...] = jnp.zeros_like(stats_ref)

    x = x_ref[...]                       # (tn, 3)
    w = w_ref[...]                       # (3, 10)
    # Linear as 3 VPU FMAs (K=3 would waste the MXU).
    y = (x[:, 0:1] * w[0:1, :]
         + x[:, 1:2] * w[1:2, :]
         + x[:, 2:3] * w[2:3, :]
         + b_ref[...])                   # (tn, 10)

    # Mask padded rows of a partial last tile so they don't bias the statistics.
    rows = i * tn + lax.broadcasted_iota(jnp.int32, (tn, 1), 0)
    y = jnp.where(rows < n_total, y, 0.0)

    stats_ref[0:1, :] += jnp.sum(y, axis=0, keepdims=True)
    stats_ref[1:2, :] += jnp.sum(y * y, axis=0, keepdims=True)


def norm_kernel(x_ref, wf_ref, cf_ref, o_ref):
    """Pass 2: out = x @ Wf + cf  (linear, concat, and batch-norm all pre-folded)."""
    x = x_ref[...]                       # (tn, 3)
    wf = wf_ref[...]                     # (3, 40)
    o_ref[...] = (x[:, 0:1] * wf[0:1, :]
                  + x[:, 1:2] * wf[1:2, :]
                  + x[:, 2:3] * wf[2:3, :]
                  + cf_ref[...])


def model_forward(x, w, b, gamma, beta):
    n = x.shape[0]
    tn = n if n <= MAX_ROW_TILE else MAX_ROW_TILE
    num_tiles = pl.cdiv(n, tn)

    w10 = w.T.astype(jnp.float32)                     # (3, 10)
    b10 = b.reshape(1, N_OUT).astype(jnp.float32)     # (1, 10)

    # ---- pass 1: batch statistics over the 10 unique features ----
    stats = pl.pallas_call(
        functools.partial(stats_kernel, n_total=n, tn=tn),
        out_shape=jax.ShapeDtypeStruct((2, N_OUT), jnp.float32),
        grid=(num_tiles,),
        in_specs=[
            pl.BlockSpec((tn, N_IN), lambda i: (i, 0)),
            pl.BlockSpec((N_IN, N_OUT), lambda i: (0, 0)),
            pl.BlockSpec((1, N_OUT), lambda i: (0, 0)),
        ],
        out_specs=pl.BlockSpec((2, N_OUT), lambda i: (0, 0)),
        compiler_params=pltpu.CompilerParams(
            dimension_semantics=("arbitrary",)
        ),
    )(x, w10, b10)

    # ---- fold bias/mean/inv_std/gamma/beta into one (3,40) weight + (1,40) shift ----
    mean10 = (stats[0] / n).reshape(1, N_OUT)
    var10 = jnp.maximum(stats[1].reshape(1, N_OUT) / n - mean10 * mean10, 0.0)
    inv10 = 1.0 / jnp.sqrt(var10 + BN_EPS)

    scale40 = gamma.reshape(1, N_CAT) * jnp.tile(inv10, (1, 4))        # (1, 40)
    mean40 = jnp.tile(mean10, (1, 4))                                  # (1, 40)
    b40 = jnp.tile(b10, (1, 4))                                        # (1, 40)
    w40 = jnp.tile(w10, (1, 4))                                        # (3, 40)

    wf = w40 * scale40                                                 # (3, 40)
    cf = (b40 - mean40) * scale40 + beta.reshape(1, N_CAT)             # (1, 40)

    # ---- pass 2: normalize row tiles (embarrassingly parallel over rows) ----
    out = pl.pallas_call(
        norm_kernel,
        out_shape=jax.ShapeDtypeStruct((n, N_CAT), jnp.float32),
        grid=(num_tiles,),
        in_specs=[
            pl.BlockSpec((tn, N_IN), lambda i: (i, 0)),
            pl.BlockSpec((N_IN, N_CAT), lambda i: (0, 0)),
            pl.BlockSpec((1, N_CAT), lambda i: (0, 0)),
        ],
        out_specs=pl.BlockSpec((tn, N_CAT), lambda i: (i, 0)),
        compiler_params=pltpu.CompilerParams(
            dimension_semantics=("parallel",)
        ),
    )(x, wf, cf)
    return out


if __name__ == "__main__":
    key = jax.random.PRNGKey(0)
    kx, kw, kb = jax.random.split(key, 3)

    # Deterministic parameter init (shapes per Linear(3, 10); BN affine = identity)
    x = jax.random.normal(kx, (2, N_IN), dtype=jnp.float32)
    bound = 1.0 / (N_IN ** 0.5)
    w = jax.random.uniform(kw, (N_OUT, N_IN), minval=-bound, maxval=bound,
                           dtype=jnp.float32)
    b = jax.random.uniform(kb, (N_OUT,), minval=-bound, maxval=bound,
                           dtype=jnp.float32)
    gamma = jnp.ones((N_CAT,), dtype=jnp.float32)
    beta = jnp.zeros((N_CAT,), dtype=jnp.float32)

    out = model_forward(x, w, b, gamma, beta)
    jax.block_until_ready(out)

    # Reference check in plain JAX
    y_ref = x @ w.T + b
    yc_ref = jnp.concatenate([y_ref] * 4, axis=1)
    m = yc_ref.mean(axis=0, keepdims=True)
    v = ((yc_ref - m) ** 2).mean(axis=0, keepdims=True)
    ref = (yc_ref - m) / jnp.sqrt(v + BN_EPS) * gamma + beta
    assert jnp.allclose(out, ref, atol=1e-4, rtol=1e-4), "mismatch vs reference"

    print("KERNEL_OK")
</pallas_src>

<mosaic_0001>
module attributes {stable_mosaic.version = 11 : i64} {
  func.func @stats_kernel(%arg0: i32, %arg1: memref<2x3xf32, #tpu.memory_space<vmem>>, %arg2: memref<3x10xf32, #tpu.memory_space<vmem>>, %arg3: memref<1x10xf32, #tpu.memory_space<vmem>>, %arg4: memref<2x10xf32, #tpu.memory_space<vmem>>) attributes {dimension_semantics = [#tpu.dimension_semantics<arbitrary>], iteration_bounds = array<i64: 1>, scalar_prefetch = 0 : i64, scratch_operands = 0 : i64, tpu.core_type = #tpu.core_type<tc>, window_params = [{transform_indices = @transform_0, window_bounds = array<i64: 2, 3>}, {pipeline_mode = #tpu.pipeline_mode<synchronous>, transform_indices = @transform_1, window_bounds = array<i64: 3, 10>}, {pipeline_mode = #tpu.pipeline_mode<synchronous>, transform_indices = @transform_2, window_bounds = array<i64: 1, 10>}, {pipeline_mode = #tpu.pipeline_mode<synchronous>, transform_indices = @transform_3, window_bounds = array<i64: 2, 10>}]} {
    %c0_i32 = arith.constant 0 : i32
    %0 = arith.cmpi eq, %arg0, %c0_i32 : i32
    %1 = arith.extui %0 : i1 to i32
    %c0_i32_0 = arith.constant 0 : i32
    %2 = arith.cmpi ne, %1, %c0_i32_0 : i32
    scf.if %2 {
      %cst_16 = arith.constant 0.000000e+00 : f32
      %46 = vector.broadcast %cst_16 : f32 to vector<2x10xf32>
      %c0_17 = arith.constant 0 : index
      %c0_18 = arith.constant 0 : index
      %47 = vector.load %arg4[%c0_17, %c0_18] : memref<2x10xf32, #tpu.memory_space<vmem>>, vector<2x10xf32>
      tpu.vector_store %arg4[%c0_17, %c0_18], %46 {strides = array<i32>} : memref<2x10xf32, #tpu.memory_space<vmem>>, vector<2x10xf32>,
    } else {
    }
    %c0 = arith.constant 0 : index
    %c0_1 = arith.constant 0 : index
    %3 = vector.load %arg1[%c0, %c0_1] : memref<2x3xf32, #tpu.memory_space<vmem>>, vector<2x3xf32>
    %c0_2 = arith.constant 0 : index
    %c0_3 = arith.constant 0 : index
    %4 = vector.load %arg2[%c0_2, %c0_3] : memref<3x10xf32, #tpu.memory_space<vmem>>, vector<3x10xf32>
    %5 = vector.extract_strided_slice %3 {offsets = [0, 0], sizes = [2, 1], strides = [1, 1]} : vector<2x3xf32> to vector<2x1xf32>
    %6 = vector.extract_strided_slice %4 {offsets = [0, 0], sizes = [1, 10], strides = [1, 1]} : vector<3x10xf32> to vector<1x10xf32>
    %7 = vector.broadcast %5 : vector<2x1xf32> to vector<2x10xf32>
    %8 = vector.broadcast %6 : vector<1x10xf32> to vector<2x10xf32>
    %9 = arith.mulf %7, %8 : vector<2x10xf32>
    %10 = vector.extract_strided_slice %3 {offsets = [0, 1], sizes = [2, 1], strides = [1, 1]} : vector<2x3xf32> to vector<2x1xf32>
    %11 = vector.extract_strided_slice %4 {offsets = [1, 0], sizes = [1, 10], strides = [1, 1]} : vector<3x10xf32> to vector<1x10xf32>
    %12 = vector.broadcast %10 : vector<2x1xf32> to vector<2x10xf32>
    %13 = vector.broadcast %11 : vector<1x10xf32> to vector<2x10xf32>
    %14 = arith.mulf %12, %13 : vector<2x10xf32>
    %15 = arith.addf %9, %14 : vector<2x10xf32>
    %16 = vector.extract_strided_slice %3 {offsets = [0, 2], sizes = [2, 1], strides = [1, 1]} : vector<2x3xf32> to vector<2x1xf32>
    %17 = vector.extract_strided_slice %4 {offsets = [2, 0], sizes = [1, 10], strides = [1, 1]} : vector<3x10xf32> to vector<1x10xf32>
    %18 = vector.broadcast %16 : vector<2x1xf32> to vector<2x10xf32>
    %19 = vector.broadcast %17 : vector<1x10xf32> to vector<2x10xf32>
    %20 = arith.mulf %18, %19 : vector<2x10xf32>
    %21 = arith.addf %15, %20 : vector<2x10xf32>
    %c0_4 = arith.constant 0 : index
    %c0_5 = arith.constant 0 : index
    %22 = vector.load %arg3[%c0_4, %c0_5] : memref<1x10xf32, #tpu.memory_space<vmem>>, vector<1x10xf32>
    %23 = vector.broadcast %22 : vector<1x10xf32> to vector<2x10xf32>
    %24 = arith.addf %21, %23 : vector<2x10xf32>
    %c2_i32 = arith.constant 2 : i32
    %25 = arith.muli %arg0, %c2_i32 : i32
    %26 = tpu.iota {dimensions = array<i32: 0>} : vector<2x1xi32>
    %27 = vector.broadcast %25 : i32 to vector<2x1xi32>
    %28 = arith.addi %27, %26 : vector<2x1xi32>
    %c2_i32_6 = arith.constant 2 : i32
    %29 = vector.broadcast %c2_i32_6 : i32 to vector<2x1xi32>
    %30 = arith.cmpi slt, %28, %29 : vector<2x1xi32>
    %cst = arith.constant 0.000000e+00 : f32
    %31 = vector.shape_cast %30 : vector<2x1xi1> to vector<2x1xi1>
    %32 = vector.broadcast %31 : vector<2x1xi1> to vector<2x10xi1>
    %33 = vector.broadcast %cst : f32 to vector<2x10xf32>
    %34 = arith.select %32, %24, %33 : vector<2x10xi1>, vector<2x10xf32>
    %c0_7 = arith.constant 0 : index
    %c0_8 = arith.constant 0 : index
    %35 = vector.load %arg4[%c0_7, %c0_8] : memref<2x10xf32, #tpu.memory_space<vmem>>, vector<1x10xf32>
    %cst_9 = arith.constant dense<0.000000e+00> : vector<10xf32>
    %36 = vector.multi_reduction <add>, %34, %cst_9 [0] : vector<2x10xf32> to vector<10xf32>
    %37 = vector.shape_cast %36 : vector<10xf32> to vector<1x10xf32>
    %38 = arith.addf %35, %37 : vector<1x10xf32>
    %c0_10 = arith.constant 0 : index
    %c0_11 = arith.constant 0 : index
    %39 = vector.load %arg4[%c0_10, %c0_11] : memref<2x10xf32, #tpu.memory_space<vmem>>, vector<1x10xf32>
    tpu.vector_store %arg4[%c0_10, %c0_11], %38 {strides = array<i32>} : memref<2x10xf32, #tpu.memory_space<vmem>>, vector<1x10xf32>,
    %c1 = arith.constant 1 : index
    %c0_12 = arith.constant 0 : index
    %40 = vector.load %arg4[%c1, %c0_12] : memref<2x10xf32, #tpu.memory_space<vmem>>, vector<1x10xf32>
    %41 = arith.mulf %34, %34 : vector<2x10xf32>
    %cst_13 = arith.constant dense<0.000000e+00> : vector<10xf32>
    %42 = vector.multi_reduction <add>, %41, %cst_13 [0] : vector<2x10xf32> to vector<10xf32>
    %43 = vector.shape_cast %42 : vector<10xf32> to vector<1x10xf32>
    %44 = arith.addf %40, %43 : vector<1x10xf32>
    %c1_14 = arith.constant 1 : index
    %c0_15 = arith.constant 0 : index
    %45 = vector.load %arg4[%c1_14, %c0_15] : memref<2x10xf32, #tpu.memory_space<vmem>>, vector<1x10xf32>
    tpu.vector_store %arg4[%c1_14, %c0_15], %44 {strides = array<i32>} : memref<2x10xf32, #tpu.memory_space<vmem>>, vector<1x10xf32>,
    return
  }
  func.func @transform_0(%arg0: i32) -> (i32, i32) {
    %c0_i32 = arith.constant 0 : i32
    %c0_i32_0 = arith.constant 0 : i32
    return %arg0, %c0_i32 : i32, i32
  }
  func.func @transform_1(%arg0: i32) -> (i32, i32) {
    %c0_i32 = arith.constant 0 : i32
    %c0_i32_0 = arith.constant 0 : i32
    %c0_i32_1 = arith.constant 0 : i32
    return %c0_i32, %c0_i32_0 : i32, i32
  }
  func.func @transform_2(%arg0: i32) -> (i32, i32) {
    %c0_i32 = arith.constant 0 : i32
    %c0_i32_0 = arith.constant 0 : i32
    %c0_i32_1 = arith.constant 0 : i32
    return %c0_i32, %c0_i32_0 : i32, i32
  }
  func.func @transform_3(%arg0: i32) -> (i32, i32) {
    %c0_i32 = arith.constant 0 : i32
    %c0_i32_0 = arith.constant 0 : i32
    %c0_i32_1 = arith.constant 0 : i32
    return %c0_i32, %c0_i32_0 : i32, i32
  }
}

</mosaic_0001>

<bundles_post_ra>
// kernel: tpu_custom_call.1
= control target key start
LH: loop header
LB: loop body
LE: loop exit
PB: predicated region body
PF: predicated region fallthrough
CT: control target
= control target key end

     0   :  { %8 = vsyncpa [#allocation3], 0  ;;  %s253_s0 = inlined_call_operand.hbm [shape: f32[2,3], index: 0, kind: input, shape index: {}]   ;;  %s254_s1 = inlined_call_operand.hbm [shape: f32[3,10], index: 1, kind: input, shape index: {}]   ;;  %s255_s2 = inlined_call_operand.vmem [shape: f32[1,10], index: 2, kind: input, shape index: {}]   ;;  %s256_s3 = inlined_call_operand.hbm [shape: f32[2,10], index: 3, kind: output, shape index: {}]  }
   0x1   :  { %9 = vsyncpa [#allocation6], 0 }
   0x2   :  { %10 = vsyncpa [#allocation4], 0  ;;  %s211_s12 = smov [#allocation2]   ;;  %s212_s14 = smov [#allocation5]  }
   0x3   :  { %s17_s13 = sshll.u32 %s211_s12, 4  ;;  %s27_s15 = sshll.u32 %s212_s14, 4  ;;  %s18_s13 = int_to_ptr.vmem [resolvable:$true] %s17_s13  ;;  %s28_s15 = int_to_ptr.vmem [resolvable:$true] %s27_s15 }
   0x4   :  { %s153_s16 = scalar_lea.vmem %s18_s13, 32  ;;  %p158_p1 = scmp.lt.s32.totalorder %s18_s13, %s18_s13 }
   0x5   :  { %p154_p0 = scmp.ne.s32.totalorder %s18_s13, %s153_s16  ;;  %p159_p2 = scmp.lt.s32.totalorder %s153_s16, %s153_s16 }
   0x7   :  { %p160_p3 = por %p159_p2, %p158_p1 }
   0x9   :  { %p161_p4 = pnand %p160_p3, %p154_p0 }
   0xb   :  { %164 = shalt.err (!%p161_p4)
}
   0xc   :  { %20 = dma.hbm_to_vmem [thread:$0]  %s253_s0, 32, %s18_s13, [#allocation3]  }
   0xd   :  { %s173_s19 = scalar_lea.vmem %s28_s15, 64  ;;  %p178_p6 = scmp.lt.s32.totalorder %s28_s15, %s28_s15 }
   0xe   :  { %p174_p5 = scmp.ne.s32.totalorder %s28_s15, %s173_s19  ;;  %p179_p7 = scmp.lt.s32.totalorder %s173_s19, %s173_s19 }
  0x10   :  { %p180_p8 = por %p179_p7, %p178_p6 }
  0x12   :  { %p181_p9 = pnand %p180_p8, %p174_p5 }
  0x14   :  { %184 = shalt.err (!%p181_p9)
}
  0x15   :  { %30 = dma.hbm_to_vmem [thread:$0]  %s254_s1, 64, %s28_s15, [#allocation6]  }
  0x16   :  { %205 = dma.done.wait [#allocation3], 32  }
  0x17   :  { %206 = vsyncadd [#allocation3], 4294967264 }
  0x18   :  { %207 = dma.done.wait [#allocation6], 64  }
  0x19   :  { %208 = vsyncadd [#allocation6], 4294967232  ;;  %v213_v0 = vmov 0   ;;  %v214_v1 = vmov 2   ;;  %v45_v2 = vld [vmem:[#allocation2] sm:$0x3]  ;;  %v52_v5 = vlaneseq }
  0x1a   :  { %141 = vset.pattern.permute.xlu0 %v213_v0  ;;  %143 = vset.pattern.permute.xlu1 %v214_v1  ;;  %v215_v3 = vmov 1   ;;  %vm43_vm0 = vcmask 74752   ;;  %v216_v4 = vmov 0.0   ;;  %v46_v10 = vld [vmem:[#allocation5] sm:$0x7]  ;;  %vm104_vm2 = vcmask 73728  }
  0x1b   :  { %49 = vperm.xlu0 %141, %v45_v2   ;;  %68 = vperm.xlu1 %143, %v45_v2   ;;  %44 = vst.msk [vmem:[#allocation7] sm:$0x3] %vm43_vm0, %v216_v4  ;;  %v53_v6 = vshrl.u32 %v52_v5, 7  ;;  %v133_v21 = vld [vmem:[%s255_s2] ss:$0 sm:$0xff]  ;;  %s217_s2 = smov [#allocation7]  }
  0x1c   :  { %s123_s22 = sshll.u32 %s217_s2, 4  ;;  %s124_s22 = int_to_ptr.vmem [resolvable:$true] %s123_s22 }
  0x1d   :  { %v54_v7 = vsub.s32 0, %v53_v6  ;;  %v63_v8 = vsub.s32 1, %v53_v6  ;;  %v73_v9 = vsub.s32 2, %v53_v6  ;;  %vm90_vm1 = vcmp.lt.s32.totalorder %v53_v6, 2  ;;  %s185_s23 = scalar_lea.vmem %s124_s22, 32  ;;  %p190_p11 = scmp.lt.s32.totalorder %s124_s22, %s124_s22 }
  0x1e   :  { %p186_p10 = scmp.ne.s32.totalorder %s124_s22, %s185_s23  ;;  %p191_p12 = scmp.lt.s32.totalorder %s185_s23, %s185_s23 }
  0x1f   :  { %142 = vset.pattern.permute.xlu0 %v215_v3  ;;  %v55_v12 = vrot.slane %v46_v10, %v54_v7  ;;  %v64_v13 = vrot.slane %v46_v10, %v63_v8  ;;  %v74_v14 = vrot.slane %v46_v10, %v73_v9 }
  0x20   :  { %58 = vperm.xlu0 %142, %v45_v2   ;;  %p192_p13 = por %p191_p12, %p190_p11 }
  0x22   :  { %v94_v37 = vld [vmem:[#allocation7] sm:$0x1]  ;;  %v106_v40 = vld [vmem:[#allocation7 + $0x1] sm:$0x1]  ;;  %p193_p0 = pnand %p192_p13, %p186_p10 }
  0x24   :  { %144 = vset.pattern.permute.xlu0 %v214_v1 }
  0x96   :  { %v50_v11 = vpop.permute.xlu0 %49  ;;  %v69_v15 = vpop.permute.xlu1 %68 }
  0x97   :  { %v56_v17 = vmul.f32 %v55_v12, %v50_v11  ;;  %v75_v19 = vmul.f32 %v74_v14, %v69_v15 }
  0x9b   :  { %v59_v16 = vpop.permute.xlu0 %58 }
  0x9c   :  { %v65_v18 = vmul.f32 %v64_v13, %v59_v16 }
  0x9e   :  { %v66_v20 = vadd.f32 %v65_v18, %v56_v17 }
  0xa0   :  { %v76_v22 = vadd.f32 %v75_v19, %v66_v20 }
  0xa2   :  { %v84_v23 = vadd.f32 %v133_v21, %v76_v22 }
  0xa4   :  { %v93_v24 = vsel %vm90_vm1, %v84_v23, 0.0 }
  0xa5   :  { %v96_v25 = vsel %vm43_vm0, %v93_v24, 0.0  ;;  %v107_v26 = vmul.f32 %v93_v24, %v93_v24 }
  0xa6   :  { %v97_v27 = vrot.slane %v96_v25, 4 }
  0xa7   :  { %v108_v28 = vsel %vm43_vm0, %v107_v26, 0.0 }
  0xa8   :  { %v98_v29 = vadd.f32 %v97_v27, %v96_v25  ;;  %v109_v30 = vrot.slane %v108_v28, 4 }
  0xaa   :  { %v99_v31 = vrot.slane %v98_v29, 2  ;;  %v110_v32 = vadd.f32 %v109_v30, %v108_v28 }
  0xac   :  { %v100_v33 = vadd.f32 %v99_v31, %v98_v29  ;;  %v111_v34 = vrot.slane %v110_v32, 2 }
  0xae   :  { %v101_v35 = vrot.slane %v100_v33, 1  ;;  %v112_v36 = vadd.f32 %v111_v34, %v110_v32 }
  0xb0   :  { %v102_v38 = vadd.f32 %v101_v35, %v100_v33  ;;  %v113_v39 = vrot.slane %v112_v36, 1 }
  0xb2   :  { %v103_v41 = vadd.f32 %v102_v38, %v94_v37  ;;  %v114_v42 = vadd.f32 %v113_v39, %v112_v36 }
  0xb4   :  { %105 = vst.msk [vmem:[#allocation7] sm:$0x1] %vm104_vm2, %v103_v41  ;;  %v115_v43 = vadd.f32 %v114_v42, %v106_v40 }
  0xb6   :  { %116 = vst.msk [vmem:[#allocation7 + $0x1] sm:$0x1] %vm104_vm2, %v115_v43 }
  0xb7   :  { %196 = shalt.err (!%p193_p0)
}
  0xb8   :  { %126 = dma.vmem_to_hbm [thread:$0]  %s124_s22, 32, %s256_s3, [#allocation4]  }
  0xb9   :  { %209 = dma.done.wait [#allocation4], 32  }
  0xba   :  { %210 = vsyncadd [#allocation4], 4294967264 }
  0xbb   :  { %130 = vsyncpa [#allocation3], 1 }
  0xbc   :  { %131 = vsyncpa [#allocation6], 1 }
  0xbd   :  { %132 = vsyncpa [#allocation4], 1 }

</bundles_post_ra>
